<compile_context>
chip_gen: v7x
topology: tpu7x:2x2x1
jax: 0.10.0
libtpu: 0.0.40
codegen_flags: <defaults>
</compile_context>

<pallas_src>
import functools
import math

import jax
import jax.numpy as jnp
from jax.experimental import pallas as pl
from jax.experimental.pallas import tpu as pltpu

_LANE = 128
_SUBLANE = 8
_NEG_BIG = -1e30  # padded action lanes: exp(-1e30 - m) underflows to exactly 0


def _round_up(n, m):
    return ((n + m - 1) // m) * m


# ---------------------------------------------------------------------------
# Pallas kernel: fused 3-layer MLP + softmax for one batch tile (all f32)
# ---------------------------------------------------------------------------
def _actor_kernel(x_ref, w_ref, b_ref, out_ref):
    d = x_ref.shape[1]          # padded input dim
    wmax = w_ref.shape[1]       # padded hidden/action width (multiple of 128)

    x = x_ref[...]                                   # (tb, Dp)
    w1 = w_ref[0:d, :]                               # (Dp,   Wmax)
    w2 = w_ref[d:d + wmax, :]                        # (Wmax, Wmax)
    w3 = w_ref[d + wmax:d + 2 * wmax, :]             # (Wmax, Wmax)

    # dense_1 + ReLU
    h = jnp.dot(x, w1, preferred_element_type=jnp.float32) + b_ref[0]
    h = jnp.maximum(h, 0.0)
    # dense_2 + ReLU
    h = jnp.dot(h, w2, preferred_element_type=jnp.float32) + b_ref[1]
    h = jnp.maximum(h, 0.0)
    # output linear (padded action lanes get -1e30 bias)
    logits = jnp.dot(h, w3, preferred_element_type=jnp.float32) + b_ref[2]

    # softmax over the action dim (torch nn.Softmax() -> dim=1 on 2-D input);
    # padded lanes contribute exactly 0, so this equals softmax over the real A.
    m = jnp.max(logits, axis=-1, keepdims=True)
    e = jnp.exp(logits - m)
    s = jnp.sum(e, axis=-1, keepdims=True)
    out_ref[...] = e * pl.reciprocal(s, approx=True)   # EUP, lane-dense store


# ---------------------------------------------------------------------------
# Wrapper
# ---------------------------------------------------------------------------
@functools.partial(jax.jit, static_argnames=("out_action", "batch_tile"))
def actor_forward(packed, x, *, out_action, batch_tile=1024):
    """x: [B, input] f32 -> action probabilities [B, out_action] f32."""
    B, D = x.shape
    w_packed = packed["w"]          # (Dp + 2*Wmax, Wmax)
    b_packed = packed["b"]          # (3, 1, Wmax)
    wmax = w_packed.shape[1]
    dp = w_packed.shape[0] - 2 * wmax

    if dp != D:                     # pad feature dim to the packed width
        x = jnp.pad(x, ((0, 0), (0, dp - D)))

    # Batch tile: big (amortize ~0.35us/grid-step), clamped for tiny batches.
    tb = min(batch_tile, _round_up(B, _SUBLANE))
    b_pad = _round_up(B, tb)
    if b_pad != B:
        x = jnp.pad(x, ((0, b_pad - B), (0, 0)))
    n_tiles = b_pad // tb

    out = pl.pallas_call(
        _actor_kernel,
        out_shape=jax.ShapeDtypeStruct((b_pad, wmax), jnp.float32),
        grid=(n_tiles,),
        in_specs=[
            pl.BlockSpec((tb, dp), lambda i: (i, 0)),              # x tile
            pl.BlockSpec(w_packed.shape, lambda i: (0, 0)),        # packed weights
            pl.BlockSpec(b_packed.shape, lambda i: (0, 0, 0)),     # packed biases
        ],
        out_specs=pl.BlockSpec((tb, wmax), lambda i: (i, 0)),      # lane-dense
        compiler_params=pltpu.CompilerParams(
            dimension_semantics=("parallel",)),
    )(x, w_packed, b_packed)

    return out[:B, :out_action]


# ---------------------------------------------------------------------------
# Parameter init (torch nn.Linear default: U(-1/sqrt(fan_in), 1/sqrt(fan_in))
# for weight and bias — init_weights() is never called in the constructor).
# Weights stored (in, out); transpose when loading real torch checkpoints.
# ---------------------------------------------------------------------------
def init_params(key, *, input_dim, hidden, out_action):
    ks = jax.random.split(key, 6)

    def linear(kw, kb, fan_in, fan_out):
        lim = 1.0 / math.sqrt(fan_in)
        w = jax.random.uniform(kw, (fan_in, fan_out), jnp.float32, -lim, lim)
        b = jax.random.uniform(kb, (fan_out,), jnp.float32, -lim, lim)
        return w, b

    w1, b1 = linear(ks[0], ks[1], input_dim, hidden)
    w2, b2 = linear(ks[2], ks[3], hidden, hidden)
    w3, b3 = linear(ks[4], ks[5], hidden, out_action)
    return dict(w1=w1, b1=b1, w2=w2, b2=b2, w3=w3, b3=b3)


def pack_params(raw, *, input_dim, hidden, out_action):
    """One-time (outside the hot path) packing into two VMEM-resident slabs."""
    dp = _round_up(input_dim, _SUBLANE)
    wmax = max(_round_up(hidden, _LANE), _round_up(out_action, _LANE))

    w1 = jnp.zeros((dp, wmax), jnp.float32).at[:input_dim, :hidden].set(raw["w1"])
    w2 = jnp.zeros((wmax, wmax), jnp.float32).at[:hidden, :hidden].set(raw["w2"])
    w3 = jnp.zeros((wmax, wmax), jnp.float32).at[:hidden, :out_action].set(raw["w3"])
    w_packed = jnp.concatenate([w1, w2, w3], axis=0)            # (Dp+2*Wmax, Wmax)

    b1 = jnp.zeros((wmax,), jnp.float32).at[:hidden].set(raw["b1"])
    b2 = jnp.zeros((wmax,), jnp.float32).at[:hidden].set(raw["b2"])
    b3 = jnp.full((wmax,), _NEG_BIG, jnp.float32).at[:out_action].set(raw["b3"])
    b_packed = jnp.stack([b1, b2, b3])[:, None, :]              # (3, 1, Wmax)

    return {"w": w_packed, "b": b_packed}


# ---------------------------------------------------------------------------
if __name__ == "__main__":
    # Small config consistent with ActorNonConvNetwork(num_hidden_layers,
    # output_action, input).
    B = 2
    INPUT_DIM = 16        # `input`
    NUM_HIDDEN = 32       # `num_hidden_layers`
    OUTPUT_ACTION = 8     # `output_action`

    key = jax.random.PRNGKey(0)
    k_x, k_p = jax.random.split(key)

    x = jax.random.normal(k_x, (B, INPUT_DIM), jnp.float32)
    raw = init_params(k_p, input_dim=INPUT_DIM, hidden=NUM_HIDDEN,
                      out_action=OUTPUT_ACTION)
    packed = pack_params(raw, input_dim=INPUT_DIM, hidden=NUM_HIDDEN,
                         out_action=OUTPUT_ACTION)

    probs = actor_forward(packed, x, out_action=OUTPUT_ACTION)
    probs = jax.block_until_ready(probs)

    # Pure-JAX f32 reference (same semantics as the torch module's forward).
    h = jnp.maximum(x @ raw["w1"] + raw["b1"], 0.0)
    h = jnp.maximum(h @ raw["w2"] + raw["b2"], 0.0)
    ref = jax.nn.softmax(h @ raw["w3"] + raw["b3"], axis=-1)

    assert probs.shape == (B, OUTPUT_ACTION), probs.shape
    # Loose tolerances: softmax denom uses the EUP approx reciprocal.
    assert jnp.allclose(jnp.sum(probs, axis=-1), 1.0, atol=2e-2)
    assert bool(jnp.all(probs >= 0.0))
    assert jnp.allclose(probs, ref, atol=1e-2, rtol=1e-2)
    print("KERNEL_OK")
</pallas_src>

<mosaic_0001>
module attributes {stable_mosaic.version = 11 : i64} {
  func.func @_actor_kernel(%arg0: i32, %arg1: memref<8x16xf32, #tpu.memory_space<vmem>>, %arg2: memref<272x128xf32, #tpu.memory_space<vmem>>, %arg3: memref<3x1x128xf32, #tpu.memory_space<vmem>>, %arg4: memref<8x128xf32, #tpu.memory_space<vmem>>) attributes {dimension_semantics = [#tpu.dimension_semantics<parallel>], iteration_bounds = array<i64: 1>, scalar_prefetch = 0 : i64, scratch_operands = 0 : i64, tpu.core_type = #tpu.core_type<tc>, window_params = [{transform_indices = @transform_0, window_bounds = array<i64: 8, 16>}, {pipeline_mode = #tpu.pipeline_mode<synchronous>, transform_indices = @transform_1, window_bounds = array<i64: 272, 128>}, {pipeline_mode = #tpu.pipeline_mode<synchronous>, transform_indices = @transform_2, window_bounds = array<i64: 3, 1, 128>}, {transform_indices = @transform_3, window_bounds = array<i64: 8, 128>}]} {
    %c0 = arith.constant 0 : index
    %c0_0 = arith.constant 0 : index
    %0 = vector.load %arg1[%c0, %c0_0] : memref<8x16xf32, #tpu.memory_space<vmem>>, vector<8x16xf32>
    %c0_1 = arith.constant 0 : index
    %c0_2 = arith.constant 0 : index
    %1 = vector.load %arg2[%c0_1, %c0_2] : memref<272x128xf32, #tpu.memory_space<vmem>>, vector<16x128xf32>
    %c16 = arith.constant 16 : index
    %c0_3 = arith.constant 0 : index
    %2 = vector.load %arg2[%c16, %c0_3] : memref<272x128xf32, #tpu.memory_space<vmem>>, vector<128x128xf32>
    %c144 = arith.constant 144 : index
    %c0_4 = arith.constant 0 : index
    %3 = vector.load %arg2[%c144, %c0_4] : memref<272x128xf32, #tpu.memory_space<vmem>>, vector<128x128xf32>
    %cst = arith.constant dense<0.000000e+00> : vector<8x128xf32>
    %4 = tpu.matmul %0, %1, %cst {dimension_numbers = #tpu.dot_dimension_numbers<[1], [0], [0], [1], [0, 0, 1, 1], [], []>} : vector<8x16xf32>, vector<16x128xf32>, vector<8x128xf32> -> vector<8x128xf32>
    %c0_5 = arith.constant 0 : index
    %c0_6 = arith.constant 0 : index
    %c0_7 = arith.constant 0 : index
    %5 = vector.load %arg3[%c0_5, %c0_6, %c0_7] : memref<3x1x128xf32, #tpu.memory_space<vmem>>, vector<1x1x128xf32>
    %6 = vector.shape_cast %5 : vector<1x1x128xf32> to vector<1x128xf32>
    %7 = vector.broadcast %6 : vector<1x128xf32> to vector<8x128xf32>
    %8 = arith.addf %4, %7 : vector<8x128xf32>
    %cst_8 = arith.constant 0.000000e+00 : f32
    %9 = vector.broadcast %cst_8 : f32 to vector<8x128xf32>
    %10 = arith.maximumf %8, %9 : vector<8x128xf32>
    %cst_9 = arith.constant dense<0.000000e+00> : vector<8x128xf32>
    %11 = tpu.matmul %10, %2, %cst_9 {dimension_numbers = #tpu.dot_dimension_numbers<[1], [0], [0], [1], [0, 0, 1, 1], [], []>} : vector<8x128xf32>, vector<128x128xf32>, vector<8x128xf32> -> vector<8x128xf32>
    %c1 = arith.constant 1 : index
    %c0_10 = arith.constant 0 : index
    %c0_11 = arith.constant 0 : index
    %12 = vector.load %arg3[%c1, %c0_10, %c0_11] : memref<3x1x128xf32, #tpu.memory_space<vmem>>, vector<1x1x128xf32>
    %13 = vector.shape_cast %12 : vector<1x1x128xf32> to vector<1x128xf32>
    %14 = vector.broadcast %13 : vector<1x128xf32> to vector<8x128xf32>
    %15 = arith.addf %11, %14 : vector<8x128xf32>
    %cst_12 = arith.constant 0.000000e+00 : f32
    %16 = vector.broadcast %cst_12 : f32 to vector<8x128xf32>
    %17 = arith.maximumf %15, %16 : vector<8x128xf32>
    %cst_13 = arith.constant dense<0.000000e+00> : vector<8x128xf32>
    %18 = tpu.matmul %17, %3, %cst_13 {dimension_numbers = #tpu.dot_dimension_numbers<[1], [0], [0], [1], [0, 0, 1, 1], [], []>} : vector<8x128xf32>, vector<128x128xf32>, vector<8x128xf32> -> vector<8x128xf32>
    %c2 = arith.constant 2 : index
    %c0_14 = arith.constant 0 : index
    %c0_15 = arith.constant 0 : index
    %19 = vector.load %arg3[%c2, %c0_14, %c0_15] : memref<3x1x128xf32, #tpu.memory_space<vmem>>, vector<1x1x128xf32>
    %20 = vector.shape_cast %19 : vector<1x1x128xf32> to vector<1x128xf32>
    %21 = vector.broadcast %20 : vector<1x128xf32> to vector<8x128xf32>
    %22 = arith.addf %18, %21 : vector<8x128xf32>
    %cst_16 = arith.constant dense<0xFF800000> : vector<8xf32>
    %23 = vector.multi_reduction <maximumf>, %22, %cst_16 [1] : vector<8x128xf32> to vector<8xf32>
    %24 = vector.shape_cast %23 : vector<8xf32> to vector<8x1xf32>
    %25 = vector.broadcast %24 : vector<8x1xf32> to vector<8x128xf32>
    %26 = arith.subf %22, %25 : vector<8x128xf32>
    %27 = math.exp %26 : vector<8x128xf32>
    %cst_17 = arith.constant dense<0.000000e+00> : vector<8xf32>
    %28 = vector.multi_reduction <add>, %27, %cst_17 [1] : vector<8x128xf32> to vector<8xf32>
    %29 = vector.shape_cast %28 : vector<8xf32> to vector<8x1xf32>
    %30 = tpu.reciprocal %29 {approx = true} : vector<8x1xf32> -> vector<8x1xf32>
    %31 = vector.broadcast %30 : vector<8x1xf32> to vector<8x128xf32>
    %32 = arith.mulf %27, %31 : vector<8x128xf32>
    %c0_18 = arith.constant 0 : index
    %c0_19 = arith.constant 0 : index
    %33 = vector.load %arg4[%c0_18, %c0_19] : memref<8x128xf32, #tpu.memory_space<vmem>>, vector<8x128xf32>
    tpu.vector_store %arg4[%c0_18, %c0_19], %32 {strides = array<i32>} : memref<8x128xf32, #tpu.memory_space<vmem>>, vector<8x128xf32>,
    return
  }
  func.func @transform_0(%arg0: i32) -> (i32, i32) {
    %c0_i32 = arith.constant 0 : i32
    %c0_i32_0 = arith.constant 0 : i32
    return %arg0, %c0_i32 : i32, i32
  }
  func.func @transform_1(%arg0: i32) -> (i32, i32) {
    %c0_i32 = arith.constant 0 : i32
    %c0_i32_0 = arith.constant 0 : i32
    %c0_i32_1 = arith.constant 0 : i32
    return %c0_i32, %c0_i32_0 : i32, i32
  }
  func.func @transform_2(%arg0: i32) -> (i32, i32, i32) {
    %c0_i32 = arith.constant 0 : i32
    %c0_i32_0 = arith.constant 0 : i32
    %c0_i32_1 = arith.constant 0 : i32
    %c0_i32_2 = arith.constant 0 : i32
    return %c0_i32, %c0_i32_0, %c0_i32_1 : i32, i32, i32
  }
  func.func @transform_3(%arg0: i32) -> (i32, i32) {
    %c0_i32 = arith.constant 0 : i32
    %c0_i32_0 = arith.constant 0 : i32
    return %arg0, %c0_i32 : i32, i32
  }
}

</mosaic_0001>

<bundles_post_ra>
// kernel: actor_forward.1
= control target key start
LH: loop header
LB: loop body
LE: loop exit
PB: predicated region body
PF: predicated region fallthrough
CT: control target
= control target key end

     0   :  { %8 = vsyncpa [#allocation3], 0  ;;  %s522_s12 = smov [#allocation2]   ;;  %s595_s0 = inlined_call_operand.vmem [shape: f32[8,16], index: 0, kind: input, shape index: {}]   ;;  %s596_s1 = inlined_call_operand.hbm [shape: f32[272,128], index: 1, kind: input, shape index: {}]   ;;  %s597_s2 = inlined_call_operand.vmem [shape: f32[3,1,128], index: 2, kind: input, shape index: {}]   ;;  %s598_s3 = inlined_call_operand.vmem [shape: f32[8,128], index: 3, kind: output, shape index: {}]  }
   0x1   :  { %s16_s13 = sshll.u32 %s522_s12, 4  ;;  %s498_s16 = scalar_lea.hbm %s596_s1, 4352  ;;  %s17_s13 = int_to_ptr.vmem [resolvable:$true] %s16_s13 }
   0x2   :  { %p499_p0 = scmp.ne.s32.totalorder %s596_s1, %s498_s16  ;;  %p502_p1 = scmp.lt.u32.totalorder %s498_s16, %s596_s1 }
   0x4   :  { %p504_p2 = pnand %p502_p1, %p499_p0 }
   0x6   :  { %507 = shalt.err (!%p504_p2)
}
   0x7   :  { %s508_s21 = scalar_lea.vmem %s17_s13, 4352  ;;  %p513_p4 = scmp.lt.s32.totalorder %s17_s13, %s17_s13 }
   0x8   :  { %p509_p3 = scmp.ne.s32.totalorder %s17_s13, %s508_s21  ;;  %p514_p5 = scmp.lt.s32.totalorder %s508_s21, %s508_s21 }
   0xa   :  { %p515_p6 = por %p514_p5, %p513_p4 }
   0xc   :  { %p516_p7 = pnand %p515_p6, %p509_p3 }
   0xe   :  { %519 = shalt.err (!%p516_p7)
}
   0xf   :  { %s523_s22 = smov 128   ;;  %s524_s23 = smov 8  }
  0x10   :  { %22 = dma.hbm_to_vmem [thread:$0]  %s596_s1, 4352, %s17_s13, [#allocation3], %s523_s22, %s523_s22, %s524_s23  }
  0x11   :  { %520 = dma.done.wait [#allocation3], 4352  }
  0x12   :  { %521 = vsyncadd [#allocation3], 4294962944  ;;  %v525_v0 = vmov 0.0|0.0   ;;  %vm526_vm0 = vmmov 0   ;;  %v527_v1 = vmov 0.0   ;;  %v29_v2 = vld [vmem:[#allocation2] sm:$0xff] }
  0x13   :  { %437 = vmatprep.subr.bf16.mxu0 %v525_v0  ;;  %364 = vmatprep.mubr.msk.f32.mxu0 %vm526_vm0, %v527_v1  ;;  %v30_v3 = vld [vmem:[#allocation2 + $0x8] sm:$0xff]  ;;  %v31_v5 = vld [vmem:[#allocation2 + $0x10] sm:$0xff]  ;;  %v32_v6 = vld [vmem:[#allocation2 + $0x18] sm:$0xff]  ;;  %vm70_vm1 = vcmask 130048  }
  0x14   :  { %440 = vmatprep.subr.bf16.mxu1 %v525_v0  ;;  %399 = vmatprep.mubr.msk.f32.mxu1 %vm526_vm0, %v527_v1  ;;  %v438_v4 = vpack.c.bf16 %v30_v3, %v29_v2  ;;  %v33_v7 = vld [vmem:[#allocation2 + $0x20] sm:$0xff]  ;;  %v441_v8 = vpack.c.bf16 %v32_v6, %v31_v5  ;;  %v34_v9 = vld [vmem:[#allocation2 + $0x28] sm:$0xff]  ;;  %v35_v12 = vld [vmem:[#allocation2 + $0x30] sm:$0xff] }
  0x15   :  { %v28_v10 = vld [vmem:[%s595_s0] sm:$0xff]  ;;  %v444_v11 = vpack.c.bf16 %v34_v9, %v33_v7  ;;  %v36_v13 = vld [vmem:[#allocation2 + $0x38] sm:$0xff]  ;;  %v38_v16 = vld [vmem:[#allocation2 + $0x48] sm:$0xff] }
  0x16   :  { %439 = vmatpush3.bf16.msra.mxu0 %v438_v4  ;;  %442 = vmatpush3.bf16.msra.mxu1 %v441_v8  ;;  %v447_v14 = vpack.c.bf16 %v36_v13, %v35_v12  ;;  %v37_v15 = vld [vmem:[#allocation2 + $0x40] sm:$0xff]  ;;  %v39_v18 = vld [vmem:[#allocation2 + $0x50] sm:$0xff]  ;;  %v40_v19 = vld [vmem:[#allocation2 + $0x58] sm:$0xff] }
  0x17   :  { %464 = vmatprep.subr.bf16.mxu0 %v525_v0  ;;  %443 = vmatprep.subr.bf16.mxu1 %v525_v0  ;;  %v450_v17 = vpack.c.bf16 %v38_v16, %v37_v15  ;;  %v453_v20 = vpack.c.bf16 %v40_v19, %v39_v18  ;;  %v41_v21 = vld [vmem:[#allocation2 + $0x60] sm:$0xff]  ;;  %v42_v22 = vld [vmem:[#allocation2 + $0x68] sm:$0xff]  ;;  %v43_v24 = vld [vmem:[#allocation2 + $0x70] sm:$0xff] }
  0x18   :  { %v456_v23 = vpack.c.bf16 %v42_v22, %v41_v21  ;;  %v44_v25 = vld [vmem:[#allocation2 + $0x78] sm:$0xff]  ;;  %v45_v27 = vld [vmem:[#allocation2 + $0x80] sm:$0xff]  ;;  %v46_v28 = vld [vmem:[#allocation2 + $0x88] sm:$0xff] }
  0x19   :  { %365 = vmatmul.mubr.msk.f32.vlgmr.msra.gmra.mrb[0].mxu0 %vm70_vm1, %v28_v10  ;;  %v459_v26 = vpack.c.bf16 %v44_v25, %v43_v24  ;;  %v462_v29 = vpack.c.bf16 %v46_v28, %v45_v27  ;;  %v47_v30 = vld [vmem:[#allocation2 + $0x90] sm:$0xff]  ;;  %v48_v31 = vld [vmem:[#allocation2 + $0x98] sm:$0xff]  ;;  %v49_v32 = vld [vmem:[#allocation2 + $0xa0] sm:$0xff] }
  0x1a   :  { %434 = vmatprep.mubr.msk.f32.mxu0 %vm526_vm0, %v527_v1  ;;  %445 = vmatpush3.bf16.msra.mxu1 %v444_v11  ;;  %v465_v33 = vpack.c.bf16 %v48_v31, %v47_v30  ;;  %v50_v34 = vld [vmem:[#allocation2 + $0xa8] sm:$0xff]  ;;  %v51_v36 = vld [vmem:[#allocation2 + $0xb0] sm:$0xff]  ;;  %v52_v37 = vld [vmem:[#allocation2 + $0xb8] sm:$0xff] }
  0x1b   :  { %446 = vmatprep.subr.bf16.mxu1 %v525_v0  ;;  %v468_v35 = vpack.c.bf16 %v50_v34, %v49_v32  ;;  %v471_v38 = vpack.c.bf16 %v52_v37, %v51_v36  ;;  %v53_v39 = vld [vmem:[#allocation2 + $0xc0] sm:$0xff]  ;;  %v54_v40 = vld [vmem:[#allocation2 + $0xc8] sm:$0xff]  ;;  %v55_v42 = vld [vmem:[#allocation2 + $0xd0] sm:$0xff] }
  0x1c   :  { %466 = vmatpush3.bf16.msra.mxu0 %v465_v33  ;;  %v474_v41 = vpack.c.bf16 %v54_v40, %v53_v39  ;;  %v56_v43 = vld [vmem:[#allocation2 + $0xd8] sm:$0xff]  ;;  %v57_v45 = vld [vmem:[#allocation2 + $0xe0] sm:$0xff]  ;;  %v58_v46 = vld [vmem:[#allocation2 + $0xe8] sm:$0xff] }
  0x1d   :  { %467 = vmatprep.subr.bf16.mxu0 %v525_v0  ;;  %v477_v44 = vpack.c.bf16 %v56_v43, %v55_v42  ;;  %v480_v47 = vpack.c.bf16 %v58_v46, %v57_v45  ;;  %v59_v48 = vld [vmem:[#allocation2 + $0xf0] sm:$0xff]  ;;  %v60_v49 = vld [vmem:[#allocation2 + $0xf8] sm:$0xff]  ;;  %v317_v51 = vld [vmem:[%s597_s2] ss:$0 sm:$0xff] }
  0x1e   :  { %448 = vmatpush3.bf16.msra.mxu1 %v447_v14  ;;  %v483_v50 = vpack.c.bf16 %v60_v49, %v59_v48  ;;  %v61_v56 = vld [vmem:[#allocation2 + $0x100] sm:$0xff]  ;;  %v62_v57 = vld [vmem:[#allocation2 + $0x108] sm:$0xff] }
  0x1f   :  { %449 = vmatprep.subr.bf16.mxu1 %v525_v0  ;;  %v486_v58 = vpack.c.bf16 %v62_v57, %v61_v56  ;;  %v320_v59 = vld [vmem:[%s597_s2 + $0x1] ss:$0 sm:$0xff] }
  0x20   :  { %469 = vmatpush3.bf16.msra.mxu0 %v468_v35 }
  0x21   :  { %470 = vmatprep.subr.bf16.mxu0 %v525_v0 }
  0x22   :  { %451 = vmatpush3.bf16.msra.mxu1 %v450_v17 }
  0x23   :  { %452 = vmatprep.subr.bf16.mxu1 %v525_v0 }
  0x24   :  { %472 = vmatpush3.bf16.msra.mxu0 %v471_v38 }
  0x25   :  { %473 = vmatprep.subr.bf16.mxu0 %v525_v0 }
  0x26   :  { %454 = vmatpush3.bf16.msra.mxu1 %v453_v20 }
  0x27   :  { %455 = vmatprep.subr.bf16.mxu1 %v525_v0 }
  0x28   :  { %475 = vmatpush3.bf16.msra.mxu0 %v474_v41 }
  0x29   :  { %476 = vmatprep.subr.bf16.mxu0 %v525_v0 }
  0x2a   :  { %457 = vmatpush3.bf16.msra.mxu1 %v456_v23 }
  0x2b   :  { %458 = vmatprep.subr.bf16.mxu1 %v525_v0 }
  0x2c   :  { %478 = vmatpush3.bf16.msra.mxu0 %v477_v44 }
  0x2d   :  { %479 = vmatprep.subr.bf16.mxu0 %v525_v0 }
  0x2e   :  { %460 = vmatpush3.bf16.msra.mxu1 %v459_v26 }
  0x2f   :  { %461 = vmatprep.subr.bf16.mxu1 %v525_v0 }
  0x30   :  { %481 = vmatpush3.bf16.msra.mxu0 %v480_v47 }
  0x31   :  { %482 = vmatprep.subr.bf16.mxu0 %v525_v0 }
  0x32   :  { %463 = vmatpush3.bf16.msra.mxu1 %v462_v29 }
  0x34   :  { %484 = vmatpush3.bf16.msra.mxu0 %v483_v50 }
  0x35   :  { %485 = vmatprep.subr.bf16.mxu0 %v525_v0  ;;  %v322_v0 = vld [vmem:[%s597_s2 + $0x2] ss:$0 sm:$0xff] }
  0x38   :  { %487 = vmatpush3.bf16.msra.mxu0 %v486_v58 }
  0xec   :  { %v140_v52 = vpop.f32.mrb[0].mxu0 }
  0xed   :  { %v141_v53 = vadd.f32 %v317_v51, %v140_v52  ;;  %v366_v54 = vpop.f32.mrb[1].mxu0 }
  0xef   :  { %v144_v55 = vmax.f32 %v141_v53, 0.0 }
  0xf1   :  { %400 = vmatmul.mubr.f32.vlgmr.msra.gmra.mrb[0].mxu1 %v144_v55 }
 0x1c4   :  { %v219_v60 = vpop.f32.mrb[0].mxu1 }
 0x1c5   :  { %v220_v61 = vadd.f32 %v320_v59, %v219_v60  ;;  %v401_v62 = vpop.f32.mrb[1].mxu1 }
 0x1c7   :  { %v223_v63 = vmax.f32 %v220_v61, 0.0 }
 0x1c9   :  { %435 = vmatmul.mubr.f32.vlgmr.msra.gmra.mrb[2].mxu0 %v223_v63 }
 0x29c   :  { %v298_v1 = vpop.f32.mrb[2].mxu0 }
 0x29d   :  { %v299_v2 = vadd.f32 %v322_v0, %v298_v1  ;;  %v436_v3 = vpop.f32.mrb[3].mxu0 }
 0x29f   :  { %302 = vmax.xlane.f32.xlu0 %v299_v2 }
 0x32c   :  { %v303_v4 = vpop.xlane.xlu0 %302 }
 0x32d   :  { %v304_v5 = vsub.f32 %v299_v2, %v303_v4 }
 0x32f   :  { %v305_v6 = vmul.f32 1.442695, %v304_v5 }
 0x331   :  { %494 = vpow2.f32 %v305_v6 }
 0x33b   :  { %v495_v7 = vpop.eup %494 }
 0x33c   :  { %307 = vadd.xlane.f32.xlu0 %v495_v7 }
 0x3c9   :  { %v308_v8 = vpop.xlane.xlu0 %307 }
 0x3ca   :  { %496 = vrcp.f32 %v308_v8 }
 0x3d4   :  { %v497_v9 = vpop.eup %496 }
 0x3d5   :  { %v310_v10 = vmul.f32 %v497_v9, %v495_v7 }
 0x3d7   :  { %311 = vst [vmem:[%s598_s3] sm:$0xff] %v310_v10 }
 0x3d8   :  { %316 = vsyncpa [#allocation3], 1 }

</bundles_post_ra>
